<compile_context>
chip_gen: v6e
topology: v6e:2x2x1
jax: 0.10.0
libtpu: 0.0.40
codegen_flags: <defaults>
</compile_context>

<pallas_src>
import jax
import jax.numpy as jnp
from jax.experimental import pallas as pl
from jax.experimental.pallas import tpu as pltpu


# ----------------------------------------------------------------------------- kernel

def classification_head_kernel(x_ref, w1_ref, b1_ref, w2_ref, b2_ref, o_ref):
    # x_ref: (tb, C_in); w1_ref: (C_in, H); b1_ref: (1, H)
    # w2_ref: (H, C_out); b2_ref: (1, C_out); o_ref: (tb, C_out)
    x = x_ref[...]

    # lin1 + ReLU (fused; hidden activation never leaves VMEM/vregs)
    h = jnp.dot(x, w1_ref[...], preferred_element_type=jnp.float32) + b1_ref[...]
    h = jnp.maximum(h, 0.0)

    # lin2
    logits = jnp.dot(h, w2_ref[...], preferred_element_type=jnp.float32) + b2_ref[...]

    # numerically stable softmax along the last dim
    logits = logits - jnp.max(logits, axis=-1, keepdims=True)
    p = jnp.exp(logits)
    denom = jnp.sum(p, axis=-1, keepdims=True)
    # EUP approx reciprocal + one Newton step (VALU) to recover full f32 accuracy.
    inv = pl.reciprocal(denom, approx=True)
    inv = inv * (2.0 - denom * inv)
    o_ref[...] = p * inv


# ----------------------------------------------------------------------------- wrapper

def classification_head(x, w1, b1, w2, b2, *, max_rows_per_block=512):
    """Pallas ClassificationHead forward.

    x : (..., in_channels) float32
    w1: (in_channels, hidden_channels)   (already transposed vs. torch Linear.weight)
    b1: (hidden_channels,)
    w2: (hidden_channels, out_channels)
    b2: (out_channels,)
    Returns (..., out_channels) softmax probabilities.
    """
    orig_shape = x.shape
    C_in = orig_shape[-1]
    H = w1.shape[1]
    C_out = w2.shape[1]

    # Flatten all leading dims into one dense row dimension (fills MXU M dim).
    x2 = x.reshape(-1, C_in)
    R = x2.shape[0]

    # Pad rows to a multiple of 8 so the sublane tiling is always clean.
    pad = (-R) % 8
    if pad:
        x2 = jnp.pad(x2, ((0, pad), (0, 0)))
    Rp = R + pad

    # Row-tile size: whole problem in one block when small, else a multiple of 8.
    if Rp <= max_rows_per_block:
        tb = Rp
    else:
        tb = max_rows_per_block - (max_rows_per_block % 8)

    b1_2 = b1.reshape(1, H)
    b2_2 = b2.reshape(1, C_out)

    grid = (pl.cdiv(Rp, tb),)
    out = pl.pallas_call(
        classification_head_kernel,
        out_shape=jax.ShapeDtypeStruct((Rp, C_out), jnp.float32),
        grid=grid,
        in_specs=[
            pl.BlockSpec((tb, C_in), lambda i: (i, 0)),      # x row tile
            pl.BlockSpec((C_in, H), lambda i: (0, 0)),       # w1 (VMEM-resident)
            pl.BlockSpec((1, H), lambda i: (0, 0)),          # b1
            pl.BlockSpec((H, C_out), lambda i: (0, 0)),      # w2
            pl.BlockSpec((1, C_out), lambda i: (0, 0)),      # b2
        ],
        out_specs=pl.BlockSpec((tb, C_out), lambda i: (i, 0)),
        compiler_params=pltpu.CompilerParams(
            dimension_semantics=("parallel",),
        ),
    )(x2, w1, b1_2, w2, b2_2)

    if pad:
        out = out[:R]
    return out.reshape(*orig_shape[:-1], C_out)


# ----------------------------------------------------------------------------- pure-JAX reference

def reference_forward(x, w1, b1, w2, b2):
    h = jnp.maximum(x @ w1 + b1, 0.0)
    return jax.nn.softmax(h @ w2 + b2, axis=-1)


# ----------------------------------------------------------------------------- main

if __name__ == "__main__":
    # Small shapes consistent with a classification head applied over (batch, seq):
    # batch=2, seq=8, in_channels=32, hidden_channels=128 (lane-dense), out_channels=8.
    B, S, C_IN, HID, C_OUT = 2, 8, 32, 128, 8

    root = jax.random.PRNGKey(0)
    k_x, k_w1, k_b1, k_w2, k_b2 = jax.random.split(root, 5)

    x = jax.random.normal(k_x, (B, S, C_IN), jnp.float32)
    # Torch Linear stores weight as (out, in); we pre-transpose to (in, out).
    w1 = jax.random.normal(k_w1, (C_IN, HID), jnp.float32) * 0.1
    b1 = jax.random.normal(k_b1, (HID,), jnp.float32) * 0.1
    w2 = jax.random.normal(k_w2, (HID, C_OUT), jnp.float32) * 0.1
    b2 = jax.random.normal(k_b2, (C_OUT,), jnp.float32) * 0.1

    out = classification_head(x, w1, b1, w2, b2)
    out = jax.block_until_ready(out)

    ref = reference_forward(x, w1, b1, w2, b2)
    ref = jax.block_until_ready(ref)

    assert out.shape == (B, S, C_OUT)
    assert bool(jnp.all(jnp.isfinite(out)))
    # softmax rows sum to 1
    assert bool(jnp.allclose(jnp.sum(out, axis=-1), 1.0, atol=1e-3))
    assert bool(jnp.allclose(out, ref, atol=1e-3, rtol=1e-3)), "Pallas output != JAX reference"

    print("KERNEL_OK")
</pallas_src>

<mosaic_0001>
module attributes {stable_mosaic.version = 11 : i64} {
  func.func @classification_head_kernel(%arg0: i32, %arg1: memref<16x32xf32, #tpu.memory_space<vmem>>, %arg2: memref<32x128xf32, #tpu.memory_space<vmem>>, %arg3: memref<1x128xf32, #tpu.memory_space<vmem>>, %arg4: memref<128x8xf32, #tpu.memory_space<vmem>>, %arg5: memref<1x8xf32, #tpu.memory_space<vmem>>, %arg6: memref<16x8xf32, #tpu.memory_space<vmem>>) attributes {dimension_semantics = [#tpu.dimension_semantics<parallel>], iteration_bounds = array<i64: 1>, scalar_prefetch = 0 : i64, scratch_operands = 0 : i64, tpu.core_type = #tpu.core_type<tc>, window_params = [{transform_indices = @transform_0, window_bounds = array<i64: 16, 32>}, {pipeline_mode = #tpu.pipeline_mode<synchronous>, transform_indices = @transform_1, window_bounds = array<i64: 32, 128>}, {pipeline_mode = #tpu.pipeline_mode<synchronous>, transform_indices = @transform_2, window_bounds = array<i64: 1, 128>}, {pipeline_mode = #tpu.pipeline_mode<synchronous>, transform_indices = @transform_3, window_bounds = array<i64: 128, 8>}, {pipeline_mode = #tpu.pipeline_mode<synchronous>, transform_indices = @transform_4, window_bounds = array<i64: 1, 8>}, {transform_indices = @transform_5, window_bounds = array<i64: 16, 8>}]} {
    %c0 = arith.constant 0 : index
    %c0_0 = arith.constant 0 : index
    %0 = vector.load %arg1[%c0, %c0_0] : memref<16x32xf32, #tpu.memory_space<vmem>>, vector<16x32xf32>
    %c0_1 = arith.constant 0 : index
    %c0_2 = arith.constant 0 : index
    %1 = vector.load %arg2[%c0_1, %c0_2] : memref<32x128xf32, #tpu.memory_space<vmem>>, vector<32x128xf32>
    %cst = arith.constant dense<0.000000e+00> : vector<16x128xf32>
    %2 = tpu.matmul %0, %1, %cst {dimension_numbers = #tpu.dot_dimension_numbers<[1], [0], [0], [1], [0, 0, 1, 1], [], []>} : vector<16x32xf32>, vector<32x128xf32>, vector<16x128xf32> -> vector<16x128xf32>
    %c0_3 = arith.constant 0 : index
    %c0_4 = arith.constant 0 : index
    %3 = vector.load %arg3[%c0_3, %c0_4] : memref<1x128xf32, #tpu.memory_space<vmem>>, vector<1x128xf32>
    %4 = vector.broadcast %3 : vector<1x128xf32> to vector<16x128xf32>
    %5 = arith.addf %2, %4 : vector<16x128xf32>
    %cst_5 = arith.constant 0.000000e+00 : f32
    %6 = vector.broadcast %cst_5 : f32 to vector<16x128xf32>
    %7 = arith.maximumf %5, %6 : vector<16x128xf32>
    %c0_6 = arith.constant 0 : index
    %c0_7 = arith.constant 0 : index
    %8 = vector.load %arg4[%c0_6, %c0_7] : memref<128x8xf32, #tpu.memory_space<vmem>>, vector<128x8xf32>
    %cst_8 = arith.constant dense<0.000000e+00> : vector<16x8xf32>
    %9 = tpu.matmul %7, %8, %cst_8 {dimension_numbers = #tpu.dot_dimension_numbers<[1], [0], [0], [1], [0, 0, 1, 1], [], []>} : vector<16x128xf32>, vector<128x8xf32>, vector<16x8xf32> -> vector<16x8xf32>
    %c0_9 = arith.constant 0 : index
    %c0_10 = arith.constant 0 : index
    %10 = vector.load %arg5[%c0_9, %c0_10] : memref<1x8xf32, #tpu.memory_space<vmem>>, vector<1x8xf32>
    %11 = vector.broadcast %10 : vector<1x8xf32> to vector<16x8xf32>
    %12 = arith.addf %9, %11 : vector<16x8xf32>
    %cst_11 = arith.constant dense<0xFF800000> : vector<16xf32>
    %13 = vector.multi_reduction <maximumf>, %12, %cst_11 [1] : vector<16x8xf32> to vector<16xf32>
    %14 = vector.shape_cast %13 : vector<16xf32> to vector<16x1xf32>
    %15 = vector.broadcast %14 : vector<16x1xf32> to vector<16x8xf32>
    %16 = arith.subf %12, %15 : vector<16x8xf32>
    %17 = math.exp %16 : vector<16x8xf32>
    %cst_12 = arith.constant dense<0.000000e+00> : vector<16xf32>
    %18 = vector.multi_reduction <add>, %17, %cst_12 [1] : vector<16x8xf32> to vector<16xf32>
    %19 = vector.shape_cast %18 : vector<16xf32> to vector<16x1xf32>
    %20 = tpu.reciprocal %19 {approx = true} : vector<16x1xf32> -> vector<16x1xf32>
    %21 = arith.mulf %19, %20 : vector<16x1xf32>
    %cst_13 = arith.constant 2.000000e+00 : f32
    %22 = vector.broadcast %cst_13 : f32 to vector<16x1xf32>
    %23 = arith.subf %22, %21 : vector<16x1xf32>
    %24 = arith.mulf %20, %23 : vector<16x1xf32>
    %25 = vector.broadcast %24 : vector<16x1xf32> to vector<16x8xf32>
    %26 = arith.mulf %17, %25 : vector<16x8xf32>
    %c0_14 = arith.constant 0 : index
    %c0_15 = arith.constant 0 : index
    %27 = vector.load %arg6[%c0_14, %c0_15] : memref<16x8xf32, #tpu.memory_space<vmem>>, vector<16x8xf32>
    tpu.vector_store %arg6[%c0_14, %c0_15], %26 {strides = array<i32>} : memref<16x8xf32, #tpu.memory_space<vmem>>, vector<16x8xf32>,
    return
  }
  func.func @transform_0(%arg0: i32) -> (i32, i32) {
    %c0_i32 = arith.constant 0 : i32
    %c0_i32_0 = arith.constant 0 : i32
    return %arg0, %c0_i32 : i32, i32
  }
  func.func @transform_1(%arg0: i32) -> (i32, i32) {
    %c0_i32 = arith.constant 0 : i32
    %c0_i32_0 = arith.constant 0 : i32
    %c0_i32_1 = arith.constant 0 : i32
    return %c0_i32, %c0_i32_0 : i32, i32
  }
  func.func @transform_2(%arg0: i32) -> (i32, i32) {
    %c0_i32 = arith.constant 0 : i32
    %c0_i32_0 = arith.constant 0 : i32
    %c0_i32_1 = arith.constant 0 : i32
    return %c0_i32, %c0_i32_0 : i32, i32
  }
  func.func @transform_3(%arg0: i32) -> (i32, i32) {
    %c0_i32 = arith.constant 0 : i32
    %c0_i32_0 = arith.constant 0 : i32
    %c0_i32_1 = arith.constant 0 : i32
    return %c0_i32, %c0_i32_0 : i32, i32
  }
  func.func @transform_4(%arg0: i32) -> (i32, i32) {
    %c0_i32 = arith.constant 0 : i32
    %c0_i32_0 = arith.constant 0 : i32
    %c0_i32_1 = arith.constant 0 : i32
    return %c0_i32, %c0_i32_0 : i32, i32
  }
  func.func @transform_5(%arg0: i32) -> (i32, i32) {
    %c0_i32 = arith.constant 0 : i32
    %c0_i32_0 = arith.constant 0 : i32
    return %arg0, %c0_i32 : i32, i32
  }
}

</mosaic_0001>

<bundles_post_ra>
// kernel: tpu_custom_call.1
= control target key start
LH: loop header
LB: loop body
LE: loop exit
PB: predicated region body
PF: predicated region fallthrough
CT: control target
= control target key end

     0   :  { %vm33_vm0 = vcmask 261120   ;;  %vm215_vm1 = vcmask 64512   ;;  %s448_s1 = inlined_call_operand.vmem [shape: f32[32,128], index: 1, kind: input, shape index: {}]   ;;  %s449_s0 = inlined_call_operand.vmem [shape: f32[16,32], index: 0, kind: input, shape index: {}]   ;;  %s450_s3 = inlined_call_operand.vmem [shape: f32[128,8], index: 3, kind: input, shape index: {}]   ;;  %s451_s2 = inlined_call_operand.vmem [shape: f32[1,128], index: 2, kind: input, shape index: {}]   ;;  %s452_s4 = inlined_call_operand.vmem [shape: f32[1,8], index: 4, kind: input, shape index: {}]   ;;  %s453_s5 = inlined_call_operand.vmem [shape: f32[16,8], index: 5, kind: output, shape index: {}]  }
   0x1   :  { %v25_v0 = vld [vmem:[%s448_s1 + $0x18] sm:$0xff]  ;;  %v24_v1 = vld [vmem:[%s448_s1 + $0x10] sm:$0xff]  ;;  %v20_v2 = vld [vmem:[%s449_s0] sm:$0xff] }
   0x2   :  { %278 = vmatprep.subr.mxu0 %v25_v0  ;;  %v23_v3 = vld [vmem:[%s448_s1 + $0x8] sm:$0xff]  ;;  %286 = vmatprep.mubr.msk.f32.mxu0 %vm33_vm0, %v20_v2  ;;  %v132_v4 = vld [vmem:[%s450_s3 + $0x78] sm:$0xff]  ;;  %v131_v5 = vld [vmem:[%s450_s3 + $0x70] sm:$0xff] }
   0x3   :  { %279 = vmatpush3.msra.mxu0 %v25_v0  ;;  %289 = vmatprep.subr.mxu1 %v132_v4  ;;  %v22_v6 = vld [vmem:[%s448_s1] sm:$0xff]  ;;  %v130_v7 = vld [vmem:[%s450_s3 + $0x68] sm:$0xff]  ;;  %v128_v10 = vld [vmem:[%s450_s3 + $0x58] sm:$0xff] }
   0x4   :  { %280 = vmatprep.subr.mxu0 %v24_v1  ;;  %290 = vmatpush3.msra.mxu1 %v132_v4  ;;  %v21_v8 = vld [vmem:[%s449_s0 + $0x8] sm:$0xff]  ;;  %v129_v9 = vld [vmem:[%s450_s3 + $0x60] sm:$0xff]  ;;  %v127_v11 = vld [vmem:[%s450_s3 + $0x50] sm:$0xff] }
   0x5   :  { %281 = vmatpush3.msra.mxu0 %v24_v1  ;;  %291 = vmatprep.subr.mxu1 %v131_v5  ;;  %v126_v12 = vld [vmem:[%s450_s3 + $0x48] sm:$0xff]  ;;  %v125_v13 = vld [vmem:[%s450_s3 + $0x40] sm:$0xff]  ;;  %v124_v14 = vld [vmem:[%s450_s3 + $0x38] sm:$0xff] }
   0x6   :  { %282 = vmatprep.subr.mxu0 %v23_v3  ;;  %292 = vmatpush3.msra.mxu1 %v131_v5  ;;  %v123_v15 = vld [vmem:[%s450_s3 + $0x30] sm:$0xff]  ;;  %v122_v16 = vld [vmem:[%s450_s3 + $0x28] sm:$0xff]  ;;  %v121_v17 = vld [vmem:[%s450_s3 + $0x20] sm:$0xff] }
   0x7   :  { %283 = vmatpush3.msra.mxu0 %v23_v3  ;;  %293 = vmatprep.subr.mxu1 %v130_v7  ;;  %v120_v18 = vld [vmem:[%s450_s3 + $0x18] sm:$0xff]  ;;  %v119_v19 = vld [vmem:[%s450_s3 + $0x10] sm:$0xff]  ;;  %v118_v20 = vld [vmem:[%s450_s3 + $0x8] sm:$0xff] }
   0x8   :  { %284 = vmatprep.subr.mxu0 %v22_v6  ;;  %294 = vmatpush3.msra.mxu1 %v130_v7  ;;  %v117_v21 = vld [vmem:[%s450_s3] sm:$0xff] }
   0x9   :  { %285 = vmatpush3.msra.mxu0 %v22_v6  ;;  %295 = vmatprep.subr.mxu1 %v129_v9  ;;  %v250_v22 = vld [vmem:[%s451_s2] ss:$0 sm:$0xff] }
   0xa   :  { %287 = vmatmul.mubr.msk.f32.vlgmr.msra.gmra.mxu0 %vm33_vm0, %v21_v8  ;;  %296 = vmatpush3.msra.mxu1 %v129_v9  ;;  %v253_v30 = vld [vmem:[%s452_s4] ss:$0 sm:$0xff] }
   0xb   :  { %297 = vmatprep.subr.mxu1 %v128_v10 }
   0xc   :  { %298 = vmatpush3.msra.mxu1 %v128_v10 }
   0xd   :  { %299 = vmatprep.subr.mxu1 %v127_v11 }
   0xe   :  { %300 = vmatpush3.msra.mxu1 %v127_v11 }
   0xf   :  { %301 = vmatprep.subr.mxu1 %v126_v12 }
  0x10   :  { %302 = vmatpush3.msra.mxu1 %v126_v12 }
  0x11   :  { %303 = vmatprep.subr.mxu1 %v125_v13 }
  0x12   :  { %304 = vmatpush3.msra.mxu1 %v125_v13 }
  0x13   :  { %305 = vmatprep.subr.mxu1 %v124_v14 }
  0x14   :  { %306 = vmatpush3.msra.mxu1 %v124_v14 }
  0x15   :  { %307 = vmatprep.subr.mxu1 %v123_v15 }
  0x16   :  { %308 = vmatpush3.msra.mxu1 %v123_v15 }
  0x17   :  { %309 = vmatprep.subr.mxu1 %v122_v16 }
  0x18   :  { %310 = vmatpush3.msra.mxu1 %v122_v16 }
  0x19   :  { %311 = vmatprep.subr.mxu1 %v121_v17 }
  0x1a   :  { %312 = vmatpush3.msra.mxu1 %v121_v17 }
  0x1b   :  { %313 = vmatprep.subr.mxu1 %v120_v18 }
  0x1c   :  { %314 = vmatpush3.msra.mxu1 %v120_v18 }
  0x1d   :  { %315 = vmatprep.subr.mxu1 %v119_v19 }
  0x1e   :  { %316 = vmatpush3.msra.mxu1 %v119_v19 }
  0x1f   :  { %317 = vmatprep.subr.mxu1 %v118_v20 }
  0x20   :  { %318 = vmatpush3.msra.mxu1 %v118_v20 }
  0x21   :  { %319 = vmatprep.subr.mxu1 %v117_v21 }
  0x22   :  { %320 = vmatpush3.msra.mxu1 %v117_v21 }
  0xca   :  { %v288_v23 = vpop.f32.mrf.mxu0 }
  0xcb   :  { %v112_v24 = vadd.f32 %v288_v23, %v250_v22 }
  0xcc   :  { %v106_v25 = vpop.f32.mrf.mxu0 }
  0xcd   :  { %v107_v26 = vadd.f32 %v250_v22, %v106_v25  ;;  %v116_v28 = vmax.f32 %v112_v24, 0.0 }
  0xcf   :  { %v115_v27 = vmax.f32 %v107_v26, 0.0 }
  0xd1   :  { %321 = vmatprep.mubr.f32.mxu1 %v115_v27 }
  0xd2   :  { %322 = vmatmul.mubr.f32.vlgmr.msra.gmra.mxu1 %v116_v28 }
 0x192   :  { %v323_v29 = vpop.f32.mrf.mxu1 }
 0x193   :  { %v212_v33 = vadd.f32 %v323_v29, %v253_v30 }
 0x194   :  { %v206_v31 = vpop.f32.mrf.mxu1 }
 0x195   :  { %v207_v32 = vadd.f32 %v253_v30, %v206_v31  ;;  %v219_v35 = vsel %vm215_vm1, %v212_v33, -inf }
 0x197   :  { %v216_v34 = vsel %vm215_vm1, %v207_v32, -inf }
 0x198   :  { %217 = vmax.xlane.f32.xlu0 %v216_v34 }
 0x19c   :  { %220 = vmax.xlane.f32.xlu0 %v219_v35 }
 0x221   :  { %v218_v36 = vpop.xlane.xlu0 %217 }
 0x222   :  { %v222_v37 = vsub.f32 %v207_v32, %v218_v36 }
 0x224   :  { %v224_v38 = vmul.f32 1.442695, %v222_v37 }
 0x225   :  { %v221_v39 = vpop.xlane.xlu0 %220 }
 0x226   :  { %324 = vpow2.f32 %v224_v38  ;;  %v223_v40 = vsub.f32 %v212_v33, %v221_v39 }
 0x228   :  { %v226_v41 = vmul.f32 1.442695, %v223_v40 }
 0x22a   :  { %326 = vpow2.f32 %v226_v41 }
 0x233   :  { %v325_v42 = vpop.eup %324 }
 0x234   :  { %v228_v43 = vsel %vm215_vm1, %v325_v42, 0.0 }
 0x235   :  { %229 = vadd.xlane.f32.xlu1 %v228_v43 }
 0x237   :  { %v327_v44 = vpop.eup %326 }
 0x238   :  { %v231_v45 = vsel %vm215_vm1, %v327_v44, 0.0 }
 0x239   :  { %232 = vadd.xlane.f32.xlu1 %v231_v45 }
 0x2be   :  { %v230_v46 = vpop.xlane.xlu1 %229 }
 0x2bf   :  { %328 = vrcp.f32 %v230_v46 }
 0x2c2   :  { %v233_v47 = vpop.xlane.xlu1 %232 }
 0x2c3   :  { %330 = vrcp.f32 %v233_v47 }
 0x2cc   :  { %v329_v48 = vpop.eup %328 }
 0x2cd   :  { %v236_v49 = vmul.f32 %v329_v48, %v230_v46 }
 0x2cf   :  { %v238_v50 = vsub.f32 2.0, %v236_v49 }
 0x2d0   :  { %v331_v51 = vpop.eup %330 }
 0x2d1   :  { %v240_v52 = vmul.f32 %v329_v48, %v238_v50  ;;  %v237_v53 = vmul.f32 %v331_v51, %v233_v47 }
 0x2d3   :  { %v242_v54 = vmul.f32 %v325_v42, %v240_v52  ;;  %v239_v55 = vsub.f32 2.0, %v237_v53 }
 0x2d5   :  { %244 = vst.msk [vmem:[%s453_s5] sm:$0xff] %vm215_vm1, %v242_v54  ;;  %v241_v56 = vmul.f32 %v331_v51, %v239_v55 }
 0x2d7   :  { %v243_v57 = vmul.f32 %v327_v44, %v241_v56 }
 0x2d9   :  { %245 = vst.msk [vmem:[%s453_s5 + $0x8] sm:$0xff] %vm215_vm1, %v243_v57 }

</bundles_post_ra>
